<compile_context>
chip_gen: v7x
topology: tpu7x:2x2x1
jax: 0.10.0
libtpu: 0.0.40
codegen_flags: <defaults>
</compile_context>

<pallas_src>
import functools
import math

import jax
import jax.numpy as jnp
from jax import lax
from jax.experimental import pallas as pl
from jax.experimental.pallas import tpu as pltpu

_LANES = 128
_SUBLANES = 8
_CHUNK = 512  # rows per in-kernel loop iteration (multiple of 8)


def _ce_partial_kernel(x_ref, t_ref, p_ref, *, tile, rows_total, needs_mask):
    """One grid step: sum(-t * log(x)) over a lane-dense (tile, 128) slab,
    reduced along rows into a vreg-shaped (8, 128) partial sum.

    Processed in _CHUNK-row chunks so no (tile, 128) f32 intermediate is
    materialized in VMEM (keeps headroom for the large double-buffered
    input blocks)."""
    n_chunks = tile // _CHUNK
    base_row = pl.program_id(0) * tile
    if needs_mask:
        # Hoisted out of the loop (JAX does not CSE broadcast_in_dim).
        row_iota = lax.broadcasted_iota(jnp.int32, (_CHUNK, _LANES), 0)

    def body(c, acc):
        r0 = pl.multiple_of(c * _CHUNK, _CHUNK)
        x = x_ref[pl.ds(r0, _CHUNK), :].astype(jnp.float32)
        t = t_ref[pl.ds(r0, _CHUNK), :].astype(jnp.float32)
        if needs_mask:
            # Mask rows past the end of the (ragged) last block BEFORE the
            # log/multiply so uninitialized edge data cannot produce NaN/Inf.
            valid = (base_row + r0 + row_iota) < rows_total
            x = jnp.where(valid, x, 1.0)
            t = jnp.where(valid, t, 0.0)
        term = -t * jnp.log(x)
        # Leading-dim split only (does not cross (8,128) tile boundaries) ->
        # free; the axis-0 sum is pure cross-vreg VPU adds.
        return acc + jnp.sum(
            term.reshape(_CHUNK // _SUBLANES, _SUBLANES, _LANES), axis=0)

    p_ref[...] = lax.fori_loop(
        0, n_chunks, body, jnp.zeros((_SUBLANES, _LANES), jnp.float32))


@functools.partial(jax.jit, static_argnames=("tile_rows",))
def sig_soft_target_cross_entropy(x: jax.Array, target: jax.Array,
                                  tile_rows: int = 8192) -> jax.Array:
    """Pallas implementation of SigSoftTargetCrossEntropy.forward.

    Equivalent to:  jnp.mean(jnp.sum(-target * jnp.log(x), axis=-1))
    for inputs of any rank >= 1 (mean is over all leading dims).
    """
    assert x.shape == target.shape
    assert tile_rows > 0 and tile_rows % _CHUNK == 0
    n_rows = math.prod(x.shape[:-1])  # number of per-row losses in the mean
    total = x.size

    # --- lane-dense layout: flatten to (rows, 128) -----------------------
    # Free reshape in the common case; pad by < 128 elements only if needed
    # (x -> 1.0 so log() is 0, target -> 0.0 so padded terms contribute 0).
    x_flat = x.reshape(-1)
    t_flat = target.reshape(-1)
    pad = (-total) % _LANES
    if pad:
        x_flat = jnp.pad(x_flat, (0, pad), constant_values=1)
        t_flat = jnp.pad(t_flat, (0, pad), constant_values=0)
    rows = (total + pad) // _LANES
    x2 = x_flat.reshape(rows, _LANES)
    t2 = t_flat.reshape(rows, _LANES)

    # Tile sizing: big tiles amortize per-step overhead; the last (possibly
    # ragged) block is masked in-kernel, so rows are never padded to a tile
    # boundary in HBM.
    tile = min(tile_rows, pl.cdiv(rows, _CHUNK) * _CHUNK)
    num_blocks = pl.cdiv(rows, tile)
    needs_mask = (rows % tile) != 0

    kernel = functools.partial(
        _ce_partial_kernel, tile=tile, rows_total=rows, needs_mask=needs_mask)

    partials = pl.pallas_call(
        kernel,
        out_shape=jax.ShapeDtypeStruct((num_blocks * _SUBLANES, _LANES),
                                       jnp.float32),
        grid=(num_blocks,),
        in_specs=[
            pl.BlockSpec((tile, _LANES), lambda i: (i, 0)),
            pl.BlockSpec((tile, _LANES), lambda i: (i, 0)),
        ],
        out_specs=pl.BlockSpec((_SUBLANES, _LANES), lambda i: (i, 0)),
        compiler_params=pltpu.CompilerParams(
            # Independent per-block partials -> safe to shard across TCs (v7x).
            dimension_semantics=("parallel",),
            # 16 MiB of double-buffered f32 inputs at tile=8192; raise the
            # scoped-VMEM limit so this also works on v5e's 16 MiB default.
            vmem_limit_bytes=32 * 1024 * 1024,
        ),
    )(x2, t2)

    # Tiny final cross-lane reduce of the per-block partials, then the mean
    # (fused into the same jit program).
    return jnp.sum(partials) / jnp.float32(n_rows)


if __name__ == "__main__":
    key = jax.random.PRNGKey(0)
    kx, kt = jax.random.split(key)

    # Small shapes consistent with the module: batch=2, seq=8, classes=32.
    B, S, C = 2, 8, 32
    # x must be strictly positive (log); use softmax'd logits as the module expects.
    x = jax.nn.softmax(jax.random.normal(kx, (B, S, C), dtype=jnp.float32), axis=-1)
    target = jax.nn.softmax(jax.random.normal(kt, (B, S, C), dtype=jnp.float32), axis=-1)

    loss = jax.block_until_ready(sig_soft_target_cross_entropy(x, target))
    ref = jnp.mean(jnp.sum(-target * jnp.log(x), axis=-1))
    assert jnp.allclose(loss, ref, rtol=1e-5, atol=1e-5), (loss, ref)

    # Ragged case (total not a multiple of 128) to exercise the minimal-pad
    # and in-kernel masking paths.
    kx2, kt2 = jax.random.split(kt)
    x_r = jax.nn.softmax(jax.random.normal(kx2, (3, 5, 7), dtype=jnp.float32), axis=-1)
    t_r = jax.nn.softmax(jax.random.normal(kt2, (3, 5, 7), dtype=jnp.float32), axis=-1)
    loss_r = jax.block_until_ready(sig_soft_target_cross_entropy(x_r, t_r))
    ref_r = jnp.mean(jnp.sum(-t_r * jnp.log(x_r), axis=-1))
    assert jnp.allclose(loss_r, ref_r, rtol=1e-5, atol=1e-5), (loss_r, ref_r)

    print("KERNEL_OK")
</pallas_src>

<mosaic_0001>
module attributes {stable_mosaic.version = 11 : i64} {
  func.func @_ce_partial_kernel(%arg0: i32, %arg1: memref<512x128xf32, #tpu.memory_space<vmem>>, %arg2: memref<512x128xf32, #tpu.memory_space<vmem>>, %arg3: memref<8x128xf32, #tpu.memory_space<vmem>>) attributes {dimension_semantics = [#tpu.dimension_semantics<parallel>], iteration_bounds = array<i64: 1>, scalar_prefetch = 0 : i64, scratch_operands = 0 : i64, tpu.core_type = #tpu.core_type<tc>, window_params = [{transform_indices = @transform_0, window_bounds = array<i64: 512, 128>}, {transform_indices = @transform_1, window_bounds = array<i64: 512, 128>}, {transform_indices = @transform_2, window_bounds = array<i64: 8, 128>}]} {
    %c512_i32 = arith.constant 512 : i32
    %0 = arith.muli %arg0, %c512_i32 : i32
    %1 = tpu.iota {dimensions = array<i32: 0>} : vector<512x128xi32>
    %cst = arith.constant 0.000000e+00 : f32
    %2 = vector.broadcast %cst : f32 to vector<8x128xf32>
    %c0_i32 = arith.constant 0 : i32
    %c512_i32_0 = arith.constant 512 : i32
    %3 = arith.muli %c0_i32, %c512_i32_0 : i32
    %4 = tpu.assume_multiple %3, 512 : i32
    %5 = arith.index_cast %4 : i32 to index
    %c0 = arith.constant 0 : index
    %6 = vector.load %arg1[%5, %c0] : memref<512x128xf32, #tpu.memory_space<vmem>>, vector<512x128xf32>
    %7 = arith.index_cast %4 : i32 to index
    %c0_1 = arith.constant 0 : index
    %8 = vector.load %arg2[%7, %c0_1] : memref<512x128xf32, #tpu.memory_space<vmem>>, vector<512x128xf32>
    %9 = arith.addi %0, %4 : i32
    %10 = vector.broadcast %9 : i32 to vector<512x128xi32>
    %11 = arith.addi %10, %1 : vector<512x128xi32>
    %c4_i32 = arith.constant 4 : i32
    %12 = vector.broadcast %c4_i32 : i32 to vector<512x128xi32>
    %13 = arith.cmpi slt, %11, %12 : vector<512x128xi32>
    %cst_2 = arith.constant 1.000000e+00 : f32
    %14 = vector.broadcast %cst_2 : f32 to vector<512x128xf32>
    %15 = arith.select %13, %6, %14 : vector<512x128xi1>, vector<512x128xf32>
    %cst_3 = arith.constant 0.000000e+00 : f32
    %16 = vector.broadcast %cst_3 : f32 to vector<512x128xf32>
    %17 = arith.select %13, %8, %16 : vector<512x128xi1>, vector<512x128xf32>
    %cst_4 = arith.constant 0.000000e+00 : f32
    %18 = vector.broadcast %cst_4 : f32 to vector<512x128xf32>
    %19 = arith.subf %18, %17 : vector<512x128xf32>
    %20 = math.log %15 : vector<512x128xf32>
    %21 = arith.mulf %19, %20 : vector<512x128xf32>
    %22 = vector.shape_cast %21 : vector<512x128xf32> to vector<64x8x128xf32>
    %cst_5 = arith.constant dense<0.000000e+00> : vector<8x128xf32>
    %23 = vector.multi_reduction <add>, %22, %cst_5 [0] : vector<64x8x128xf32> to vector<8x128xf32>
    %24 = arith.addf %2, %23 : vector<8x128xf32>
    %c1_i32 = arith.constant 1 : i32
    %c0_6 = arith.constant 0 : index
    %c0_7 = arith.constant 0 : index
    %25 = vector.load %arg3[%c0_6, %c0_7] : memref<8x128xf32, #tpu.memory_space<vmem>>, vector<8x128xf32>
    tpu.vector_store %arg3[%c0_6, %c0_7], %24 {strides = array<i32>} : memref<8x128xf32, #tpu.memory_space<vmem>>, vector<8x128xf32>,
    return
  }
  func.func @transform_0(%arg0: i32) -> (i32, i32) {
    %c0_i32 = arith.constant 0 : i32
    %c0_i32_0 = arith.constant 0 : i32
    return %arg0, %c0_i32 : i32, i32
  }
  func.func @transform_1(%arg0: i32) -> (i32, i32) {
    %c0_i32 = arith.constant 0 : i32
    %c0_i32_0 = arith.constant 0 : i32
    return %arg0, %c0_i32 : i32, i32
  }
  func.func @transform_2(%arg0: i32) -> (i32, i32) {
    %c0_i32 = arith.constant 0 : i32
    %c0_i32_0 = arith.constant 0 : i32
    return %arg0, %c0_i32 : i32, i32
  }
}

</mosaic_0001>

<bundles_post_ra>
// kernel: sig_soft_target_cross_entropy.1
= control target key start
LH: loop header
LB: loop body
LE: loop exit
PB: predicated region body
PF: predicated region fallthrough
CT: control target
= control target key end

     0   :  { %v12_v0 = vlaneseq  ;;  %s814_s0 = inlined_call_operand.vmem [shape: f32[4,128], index: 0, kind: input, shape index: {}]   ;;  %s815_s1 = inlined_call_operand.vmem [shape: f32[4,128], index: 1, kind: input, shape index: {}]   ;;  %s816_s2 = inlined_call_operand.vmem [shape: f32[8,128], index: 2, kind: output, shape index: {}]  }
   0x1   :  { %v77_v2 = vld [vmem:[%s814_s0] sm:$0xff] }
   0x2   :  { %v13_v1 = vshrl.u32 %v12_v0, 7  ;;  %v141_v4 = vld [vmem:[%s815_s1] sm:$0xff] }
   0x4   :  { %vm271_vm0 = vcmp.lt.s32.totalorder %v13_v1, 4 }
   0x5   :  { %v335_v3 = vsel %vm271_vm0, %v77_v2, 1.0  ;;  %v399_v5 = vsel %vm271_vm0, %v141_v4, 0.0 }
   0x6   :  { %788 = vlog2.f32 %v335_v3  ;;  %v463_v6 = vsub.f32 0.0, %v399_v5 }
  0x10   :  { %v789_v7 = vpop.eup %788 }
  0x11   :  { %v528_v8 = vmul.f32 0.6931472, %v789_v7 }
  0x13   :  { %v655_v9 = vmul.f32 %v528_v8, %v463_v6 }
  0x15   :  { %783 = vst [vmem:[%s816_s2] sm:$0xff] %v655_v9 }

</bundles_post_ra>
